<compile_context>
chip_gen: v7x
topology: tpu7x:2x2x1
jax: 0.10.0
libtpu: 0.0.40
codegen_flags: <defaults>
</compile_context>

<pallas_src>
import jax
import jax.numpy as jnp
from jax import lax
from jax.experimental import pallas as pl
from jax.experimental.pallas import tpu as pltpu

KH, KW = 3, 3  # fixed 3x3 kernel as in the module


def _vmem_limit_bytes():
    """Scoped-VMEM limit derived from the hardware (fallback: v7x-sized 64 MiB)."""
    cap = 64 * 1024 * 1024
    try:
        info = pltpu.get_tpu_info()
        cap = int(getattr(info, "vmem_capacity_bytes", cap) or cap)
    except Exception:
        pass
    limit = (3 * cap) // 4                       # ~48 MiB on v7x, ~96 MiB on v5e/v6e
    return int(min(max(limit, 32 * 1024 * 1024), 96 * 1024 * 1024))


def _pick_batch_block(n, c, hwp, in_itemsize, vmem_limit_bytes):
    """Largest divisor Nb of n whose double-buffered block + in-kernel temps fit VMEM,
    preferring >= 2 grid steps (pipelining / both v7x TensorCores) when possible."""
    in_img = c * hwp * in_itemsize               # input bytes per image in the block
    out_img = 8 * hwp * 4                        # (1, HWp) f32 output tile, 8-sublane padded
    temps = 30 * hwp * 4                         # p (9 rows) + masks + y + slack, f32
    wbytes = 2 * 9 * max(c, 8) * 4               # resident weights (tiny)

    def fits(nb):
        return 2 * nb * (in_img + out_img) + temps + wbytes <= vmem_limit_bytes

    divisors = [d for d in range(1, n + 1) if n % d == 0]
    fitting = [d for d in divisors if fits(d)]
    if not fitting:
        # TODO(synk): single image overflows VMEM -> needs H-tiling with a 1-row halo.
        return 1
    pipelined = [d for d in fitting if n // d >= 2]
    return max(pipelined) if pipelined else max(fitting)


def _make_kernel(H, W, HWp, Nb):
    # Per-tap lane-roll amounts so that rolled[pos] == p[t][pos + (kh-1)*W + (kw-1)]
    # (roll(x, s)[pos] = x[pos - s], hence s = -(offset) mod HWp).  Center tap (t=4)
    # needs no roll and no mask.
    taps = []
    for kh in range(KH):
        for kw in range(KW):
            t = kh * KW + kw
            if t == 4:
                continue
            offset = (kh - 1) * W + (kw - 1)
            taps.append((t, (-offset) % HWp, kh, kw))

    def kernel(w_ref, b_ref, x_ref, o_ref):
        # w_ref: VMEM (9, Cp)       conv weights, tap-major, resident across the grid
        # b_ref: SMEM (1,) f32      bias
        # x_ref: VMEM (Nb, Cp, HWp) input block (native dtype), plane flattened on lanes
        # o_ref: VMEM (Nb, 1, HWp)  output block, f32
        pos = lax.broadcasted_iota(jnp.int32, (1, HWp), 1)
        col = (pos & (W - 1)) if (W & (W - 1)) == 0 else (pos % W)
        top = pos < W                  # row 0      -> no (h-1) neighbor
        bot = pos >= (H - 1) * W       # last row   -> no (h+1) neighbor
        lft = col == 0                 # first col  -> no (w-1) neighbor
        rgt = col == (W - 1)           # last col   -> no (w+1) neighbor

        def edge(kh, kw):
            m = None
            if kh == 0:
                m = top
            elif kh == 2:
                m = bot
            if kw == 0:
                m = lft if m is None else (m | lft)
            elif kw == 2:
                m = rgt if m is None else (m | rgt)
            return m

        # 0/1 validity multipliers, built once per grid step (hoisted out of the image loop).
        valid = {t: jnp.where(edge(kh, kw), 0.0, 1.0).astype(jnp.float32)
                 for (t, _, kh, kw) in taps}

        w = w_ref[...]                 # (9, Cp), hoisted
        bias = b_ref[0]

        def compute_one(n):
            planes = x_ref[n]          # (Cp, HWp), native dtype (no f32 upcast)
            # Channel reduction on the MXU: (9, Cp) @ (Cp, HWp) -> (9, HWp), f32 accumulation.
            p = jnp.dot(w, planes, preferred_element_type=jnp.float32)
            y = p[4:5, :]              # center tap: no shift, never masked
            for (t, amt, _, _) in taps:
                row = p[t:t + 1, :]
                if amt:
                    row = pltpu.roll(row, amt, axis=1)   # XLU lane roll on a single row
                y = y + row * valid[t]
            o_ref[n] = jnp.exp(y + bias).astype(o_ref.dtype)

        if Nb <= 4:
            for n in range(Nb):        # tiny static trip-count: unroll is fine
                compute_one(n)
        else:
            def body(n, carry):        # bounded live ranges for larger batch blocks
                compute_one(n)
                return carry
            lax.fori_loop(0, Nb, body, 0)

    return kernel


def uncertainty_module(x, weight, bias):
    """x: (N, C, H, W); weight: (1, C, 3, 3); bias: (1,). Returns (N, 1, H, W) f32."""
    N, C, H, W = x.shape
    KHW = KH * KW
    HW = H * W
    HWp = ((HW + 127) // 128) * 128    # lane-dense plane
    Cp = ((C + 7) // 8) * 8            # sublane-aligned matmul contraction dim

    in_dtype = x.dtype
    # Weights as (9, Cp): w9[kh*3+kw, c] == weight[0, c, kh, kw]; zero-pad extra channels.
    w9 = jnp.transpose(weight.reshape(C, KHW), (1, 0)).astype(in_dtype)
    if Cp != C:
        w9 = jnp.pad(w9, ((0, 0), (0, Cp - C)))
    b_flat = bias.reshape(1).astype(jnp.float32)

    x_flat = x.reshape(N, C, HW)
    if Cp != C or HWp != HW:
        x_flat = jnp.pad(x_flat, ((0, 0), (0, Cp - C), (0, HWp - HW)))

    vmem_limit = _vmem_limit_bytes()
    Nb = _pick_batch_block(N, Cp, HWp, jnp.dtype(in_dtype).itemsize, vmem_limit)
    grid_n = N // Nb

    kernel = _make_kernel(H, W, HWp, Nb)

    out = pl.pallas_call(
        kernel,
        out_shape=jax.ShapeDtypeStruct((N, 1, HWp), jnp.float32),
        grid_spec=pltpu.PrefetchScalarGridSpec(
            num_scalar_prefetch=0,
            grid=(grid_n,),
            in_specs=[
                pl.BlockSpec((KHW, Cp), lambda n: (0, 0)),            # weights (resident)
                pl.BlockSpec(memory_space=pltpu.MemorySpace.SMEM),    # bias scalar
                pl.BlockSpec((Nb, Cp, HWp), lambda n: (n, 0, 0)),     # input block
            ],
            out_specs=pl.BlockSpec((Nb, 1, HWp), lambda n: (n, 0, 0)),
        ),
        compiler_params=pltpu.CompilerParams(
            dimension_semantics=("parallel",),
            vmem_limit_bytes=vmem_limit,
        ),
    )(w9, b_flat, x_flat)

    return out[:, :, :HW].reshape(N, 1, H, W)


def _reference(x, weight, bias):
    y = lax.conv_general_dilated(
        x, weight,
        window_strides=(1, 1),
        padding=((1, 1), (1, 1)),
        dimension_numbers=("NCHW", "OIHW", "NCHW"),
        precision=lax.Precision.HIGHEST,
    )
    return jnp.exp(y + bias.reshape(1, 1, 1, 1))


if __name__ == "__main__":
    key = jax.random.PRNGKey(0)
    k_x, k_w, k_b = jax.random.split(key, 3)

    N, C, H, W = 2, 4, 16, 16
    x = jax.random.normal(k_x, (N, C, H, W), dtype=jnp.float32)
    # Deterministic synthetic parameters (shapes from nn.Conv2d(in_channels, 1, 3, padding=1))
    weight = jax.random.normal(k_w, (1, C, KH, KW), dtype=jnp.float32) * 0.1
    bias = jax.random.normal(k_b, (1,), dtype=jnp.float32) * 0.1

    out = jax.block_until_ready(uncertainty_module(x, weight, bias))

    ref = _reference(x, weight, bias)
    assert out.shape == (N, 1, H, W), f"bad shape {out.shape}"
    # Loose-ish tolerance: covers MXU default-precision accumulation vs the HIGHEST-precision
    # XLA conv reference (errors are relative, amplified by exp).
    assert jnp.allclose(out, ref, atol=2e-2, rtol=2e-2), "mismatch vs reference conv"

    print("KERNEL_OK")
</pallas_src>

<mosaic_0001>
module attributes {stable_mosaic.version = 11 : i64} {
  func.func @kernel(%arg0: i32, %arg1: memref<9x8xf32, #tpu.memory_space<vmem>>, %arg2: memref<1xf32, #tpu.memory_space<smem>>, %arg3: memref<1x8x256xf32, #tpu.memory_space<vmem>>, %arg4: memref<1x1x256xf32, #tpu.memory_space<vmem>>) attributes {dimension_semantics = [#tpu.dimension_semantics<parallel>], iteration_bounds = array<i64: 2>, scalar_prefetch = 0 : i64, scratch_operands = 0 : i64, tpu.core_type = #tpu.core_type<tc>, window_params = [{pipeline_mode = #tpu.pipeline_mode<synchronous>, transform_indices = @transform_0, window_bounds = array<i64: 9, 8>}, {transform_indices = @transform_1, window_bounds = array<i64: 1>}, {transform_indices = @transform_2, window_bounds = array<i64: 1, 8, 256>}, {transform_indices = @transform_3, window_bounds = array<i64: 1, 1, 256>}]} {
    %0 = tpu.iota {dimensions = array<i32: 1>} : vector<1x256xi32>
    %c15_i32 = arith.constant 15 : i32
    %1 = vector.broadcast %c15_i32 : i32 to vector<1x256xi32>
    %2 = arith.andi %0, %1 : vector<1x256xi32>
    %c16_i32 = arith.constant 16 : i32
    %3 = vector.broadcast %c16_i32 : i32 to vector<1x256xi32>
    %4 = arith.cmpi slt, %0, %3 : vector<1x256xi32>
    %c240_i32 = arith.constant 240 : i32
    %5 = vector.broadcast %c240_i32 : i32 to vector<1x256xi32>
    %6 = arith.cmpi sge, %0, %5 : vector<1x256xi32>
    %c0_i32 = arith.constant 0 : i32
    %7 = vector.broadcast %c0_i32 : i32 to vector<1x256xi32>
    %8 = arith.cmpi eq, %2, %7 : vector<1x256xi32>
    %c15_i32_0 = arith.constant 15 : i32
    %9 = vector.broadcast %c15_i32_0 : i32 to vector<1x256xi32>
    %10 = arith.cmpi eq, %2, %9 : vector<1x256xi32>
    %11 = arith.ori %4, %8 : vector<1x256xi1>
    %cst = arith.constant 0.000000e+00 : f32
    %cst_1 = arith.constant 1.000000e+00 : f32
    %12 = vector.broadcast %cst : f32 to vector<1x256xf32>
    %13 = vector.broadcast %cst_1 : f32 to vector<1x256xf32>
    %14 = arith.select %11, %12, %13 : vector<1x256xi1>, vector<1x256xf32>
    %cst_2 = arith.constant 0.000000e+00 : f32
    %cst_3 = arith.constant 1.000000e+00 : f32
    %15 = vector.broadcast %cst_2 : f32 to vector<1x256xf32>
    %16 = vector.broadcast %cst_3 : f32 to vector<1x256xf32>
    %17 = arith.select %4, %15, %16 : vector<1x256xi1>, vector<1x256xf32>
    %18 = arith.ori %4, %10 : vector<1x256xi1>
    %cst_4 = arith.constant 0.000000e+00 : f32
    %cst_5 = arith.constant 1.000000e+00 : f32
    %19 = vector.broadcast %cst_4 : f32 to vector<1x256xf32>
    %20 = vector.broadcast %cst_5 : f32 to vector<1x256xf32>
    %21 = arith.select %18, %19, %20 : vector<1x256xi1>, vector<1x256xf32>
    %cst_6 = arith.constant 0.000000e+00 : f32
    %cst_7 = arith.constant 1.000000e+00 : f32
    %22 = vector.broadcast %cst_6 : f32 to vector<1x256xf32>
    %23 = vector.broadcast %cst_7 : f32 to vector<1x256xf32>
    %24 = arith.select %8, %22, %23 : vector<1x256xi1>, vector<1x256xf32>
    %cst_8 = arith.constant 0.000000e+00 : f32
    %cst_9 = arith.constant 1.000000e+00 : f32
    %25 = vector.broadcast %cst_8 : f32 to vector<1x256xf32>
    %26 = vector.broadcast %cst_9 : f32 to vector<1x256xf32>
    %27 = arith.select %10, %25, %26 : vector<1x256xi1>, vector<1x256xf32>
    %28 = arith.ori %6, %8 : vector<1x256xi1>
    %cst_10 = arith.constant 0.000000e+00 : f32
    %cst_11 = arith.constant 1.000000e+00 : f32
    %29 = vector.broadcast %cst_10 : f32 to vector<1x256xf32>
    %30 = vector.broadcast %cst_11 : f32 to vector<1x256xf32>
    %31 = arith.select %28, %29, %30 : vector<1x256xi1>, vector<1x256xf32>
    %cst_12 = arith.constant 0.000000e+00 : f32
    %cst_13 = arith.constant 1.000000e+00 : f32
    %32 = vector.broadcast %cst_12 : f32 to vector<1x256xf32>
    %33 = vector.broadcast %cst_13 : f32 to vector<1x256xf32>
    %34 = arith.select %6, %32, %33 : vector<1x256xi1>, vector<1x256xf32>
    %35 = arith.ori %6, %10 : vector<1x256xi1>
    %cst_14 = arith.constant 0.000000e+00 : f32
    %cst_15 = arith.constant 1.000000e+00 : f32
    %36 = vector.broadcast %cst_14 : f32 to vector<1x256xf32>
    %37 = vector.broadcast %cst_15 : f32 to vector<1x256xf32>
    %38 = arith.select %35, %36, %37 : vector<1x256xi1>, vector<1x256xf32>
    %c0 = arith.constant 0 : index
    %c0_16 = arith.constant 0 : index
    %39 = vector.load %arg1[%c0, %c0_16] : memref<9x8xf32, #tpu.memory_space<vmem>>, vector<9x8xf32>
    %c0_17 = arith.constant 0 : index
    %40 = memref.load %arg2[%c0_17] : memref<1xf32, #tpu.memory_space<smem>>
    %c0_18 = arith.constant 0 : index
    %c0_19 = arith.constant 0 : index
    %c0_20 = arith.constant 0 : index
    %41 = vector.load %arg3[%c0_18, %c0_19, %c0_20] : memref<1x8x256xf32, #tpu.memory_space<vmem>>, vector<1x8x256xf32>
    %42 = vector.shape_cast %41 : vector<1x8x256xf32> to vector<8x256xf32>
    %cst_21 = arith.constant dense<0.000000e+00> : vector<9x256xf32>
    %43 = tpu.matmul %39, %42, %cst_21 {dimension_numbers = #tpu.dot_dimension_numbers<[1], [0], [0], [1], [0, 0, 1, 1], [], []>} : vector<9x8xf32>, vector<8x256xf32>, vector<9x256xf32> -> vector<9x256xf32>
    %44 = vector.extract_strided_slice %43 {offsets = [4, 0], sizes = [1, 256], strides = [1, 1]} : vector<9x256xf32> to vector<1x256xf32>
    %45 = vector.extract_strided_slice %43 {offsets = [0, 0], sizes = [1, 256], strides = [1, 1]} : vector<9x256xf32> to vector<1x256xf32>
    %c17_i32 = arith.constant 17 : i32
    %46 = tpu.dynamic_rotate %45 by %c17_i32 dim 1 : vector<1x256xf32>, i32 -> vector<1x256xf32>
    %47 = arith.mulf %46, %14 : vector<1x256xf32>
    %48 = arith.addf %44, %47 : vector<1x256xf32>
    %49 = vector.extract_strided_slice %43 {offsets = [1, 0], sizes = [1, 256], strides = [1, 1]} : vector<9x256xf32> to vector<1x256xf32>
    %c16_i32_22 = arith.constant 16 : i32
    %50 = tpu.dynamic_rotate %49 by %c16_i32_22 dim 1 : vector<1x256xf32>, i32 -> vector<1x256xf32>
    %51 = arith.mulf %50, %17 : vector<1x256xf32>
    %52 = arith.addf %48, %51 : vector<1x256xf32>
    %53 = vector.extract_strided_slice %43 {offsets = [2, 0], sizes = [1, 256], strides = [1, 1]} : vector<9x256xf32> to vector<1x256xf32>
    %c15_i32_23 = arith.constant 15 : i32
    %54 = tpu.dynamic_rotate %53 by %c15_i32_23 dim 1 : vector<1x256xf32>, i32 -> vector<1x256xf32>
    %55 = arith.mulf %54, %21 : vector<1x256xf32>
    %56 = arith.addf %52, %55 : vector<1x256xf32>
    %57 = vector.extract_strided_slice %43 {offsets = [3, 0], sizes = [1, 256], strides = [1, 1]} : vector<9x256xf32> to vector<1x256xf32>
    %c1_i32 = arith.constant 1 : i32
    %58 = tpu.dynamic_rotate %57 by %c1_i32 dim 1 : vector<1x256xf32>, i32 -> vector<1x256xf32>
    %59 = arith.mulf %58, %24 : vector<1x256xf32>
    %60 = arith.addf %56, %59 : vector<1x256xf32>
    %61 = vector.extract_strided_slice %43 {offsets = [5, 0], sizes = [1, 256], strides = [1, 1]} : vector<9x256xf32> to vector<1x256xf32>
    %c255_i32 = arith.constant 255 : i32
    %62 = tpu.dynamic_rotate %61 by %c255_i32 dim 1 : vector<1x256xf32>, i32 -> vector<1x256xf32>
    %63 = arith.mulf %62, %27 : vector<1x256xf32>
    %64 = arith.addf %60, %63 : vector<1x256xf32>
    %65 = vector.extract_strided_slice %43 {offsets = [6, 0], sizes = [1, 256], strides = [1, 1]} : vector<9x256xf32> to vector<1x256xf32>
    %c241_i32 = arith.constant 241 : i32
    %66 = tpu.dynamic_rotate %65 by %c241_i32 dim 1 : vector<1x256xf32>, i32 -> vector<1x256xf32>
    %67 = arith.mulf %66, %31 : vector<1x256xf32>
    %68 = arith.addf %64, %67 : vector<1x256xf32>
    %69 = vector.extract_strided_slice %43 {offsets = [7, 0], sizes = [1, 256], strides = [1, 1]} : vector<9x256xf32> to vector<1x256xf32>
    %c240_i32_24 = arith.constant 240 : i32
    %70 = tpu.dynamic_rotate %69 by %c240_i32_24 dim 1 : vector<1x256xf32>, i32 -> vector<1x256xf32>
    %71 = arith.mulf %70, %34 : vector<1x256xf32>
    %72 = arith.addf %68, %71 : vector<1x256xf32>
    %73 = vector.extract_strided_slice %43 {offsets = [8, 0], sizes = [1, 256], strides = [1, 1]} : vector<9x256xf32> to vector<1x256xf32>
    %c239_i32 = arith.constant 239 : i32
    %74 = tpu.dynamic_rotate %73 by %c239_i32 dim 1 : vector<1x256xf32>, i32 -> vector<1x256xf32>
    %75 = arith.mulf %74, %38 : vector<1x256xf32>
    %76 = arith.addf %72, %75 : vector<1x256xf32>
    %77 = vector.broadcast %40 : f32 to vector<1x256xf32>
    %78 = arith.addf %76, %77 : vector<1x256xf32>
    %79 = math.exp %78 : vector<1x256xf32>
    %c0_25 = arith.constant 0 : index
    %c0_26 = arith.constant 0 : index
    %c0_27 = arith.constant 0 : index
    %80 = vector.load %arg4[%c0_25, %c0_26, %c0_27] : memref<1x1x256xf32, #tpu.memory_space<vmem>>, vector<1x1x256xf32>
    %81 = vector.shape_cast %80 : vector<1x1x256xf32> to vector<1x256xf32>
    %82 = vector.shape_cast %79 : vector<1x256xf32> to vector<1x1x256xf32>
    tpu.vector_store %arg4[%c0_25, %c0_26, %c0_27], %82 {strides = array<i32>} : memref<1x1x256xf32, #tpu.memory_space<vmem>>, vector<1x1x256xf32>,
    return
  }
  func.func @transform_0(%arg0: i32) -> (i32, i32) {
    %c0_i32 = arith.constant 0 : i32
    %c0_i32_0 = arith.constant 0 : i32
    %c0_i32_1 = arith.constant 0 : i32
    return %c0_i32, %c0_i32_0 : i32, i32
  }
  func.func @transform_1(%arg0: i32) -> i32 {
    %c0_i32 = arith.constant 0 : i32
    %c0_i32_0 = arith.constant 0 : i32
    return %c0_i32 : i32
  }
  func.func @transform_2(%arg0: i32) -> (i32, i32, i32) {
    %c0_i32 = arith.constant 0 : i32
    %c0_i32_0 = arith.constant 0 : i32
    %c0_i32_1 = arith.constant 0 : i32
    return %arg0, %c0_i32, %c0_i32_0 : i32, i32, i32
  }
  func.func @transform_3(%arg0: i32) -> (i32, i32, i32) {
    %c0_i32 = arith.constant 0 : i32
    %c0_i32_0 = arith.constant 0 : i32
    %c0_i32_1 = arith.constant 0 : i32
    return %arg0, %c0_i32, %c0_i32_0 : i32, i32, i32
  }
}

</mosaic_0001>

<bundles_post_ra>
// kernel: tpu_custom_call.1
= control target key start
LH: loop header
LB: loop body
LE: loop exit
PB: predicated region body
PF: predicated region fallthrough
CT: control target
= control target key end

     0   :  { %s1078_s0 = inlined_call_operand.vmem [shape: f32[9,8], index: 0, kind: input, shape index: {}]   ;;  %s1079_s1 = inlined_call_operand.<no memory space> [shape: f32[1], index: 1, kind: input, shape index: {}]   ;;  %s1080_s2 = inlined_call_operand.hbm [shape: f32[2,8,256], index: 2, kind: input, shape index: {}]   ;;  %s1081_s3 = inlined_call_operand.hbm [shape: f32[2,1,256], index: 3, kind: output, shape index: {}]  }
   0x1   :  { %8 = sst [smem:[#allocation2]] %s1079_s1 }
   0x2   :  { %9 = vsyncpa [#allocation4], 0 }
   0x3   :  { %11 = vsyncpa [#allocation4 + $0x1], 0 }
   0x4   :  { %12 = vsyncpa [#allocation5], 0 }
   0x5   :  { %14 = vsyncpa [#allocation5 + $0x1], 0  ;;  %s805_s14 = smov 0   ;;  %s807_s15 = smov 0  }
   0x6   :  { %s809_s16 = smov 0   ;;  %s811_s17 = smov 0  }
   0x7 LB: > { %s826_s1 = sadd.s32 4294967295, %s767_s17   ;;  %s590_s18 = sadd.s32 4294967294, %s767_s17   ;;  %s767_s17 = sphi %s811_s17, %s1104_s17   ;;  %s763_s16 = sphi %s809_s16, %s1103_s16   ;;  %s759_s15 = sphi %s807_s15, %s1102_s15   ;;  %s755_s14 = sphi %s805_s14, %s1101_s14  }
   0x8   : > { %s830_s19 = sadd.s32 1, %s767_s17   ;;  %s69_s20 = sadd.s32 1, %s763_s16 }
   0x9   : > { %s66_s21 = ssub.s32 %s767_s17, %s830_s19  ;;  %p76_p0 = scmp.ne.s32.totalorder %s763_s16, %s759_s15 }
   0xa   : > { %p67_p1 = scmp.eq.s32.totalorder %s66_s21, 0  ;;  %p77_p2 = scmp.eq.s32.totalorder %s767_s17, 0 }
   0xb   : > { %p82_p3 = scmp.ne.s32.totalorder %s759_s15, %s755_s14  ;;  %p83_p4 = scmp.eq.s32.totalorder %s826_s1, 0 }
   0xc   : > { %s842_s22 = scalar_select %p67_p1, %s763_s16, %s69_s20  }
   0xd   : > { %p844_p5 = por %p77_p2, %p76_p0  ;;  %p848_p6 = por %p83_p4, %p82_p3 }
   0xe   : > { %p106_p7 = scmp.eq.s32.totalorder %s826_s1, 1  ;;  %p112_p8 = scmp.eq.s32.totalorder %s590_s18, 1 }
   0xf   : > { %p622_p10 = scmp.lt.s32.totalorder %s767_s17, 2  ;;  %s138_s27 = sand.u32 1, %s763_s16  }
  0x10   : > { %p855_p11 = por %p106_p7, %p76_p0  ;;  %p859_p12 = por %p112_p8, %p82_p3 }
  0x11   : > { %s606_s28 = sshll.u32 %s767_s17, 8  ;;  %s593_s29 = sshll.u32 %s138_s27, 4 }
  0x12   : > { %s1085_s25 = scalar_select %p855_p11, 1, 0 }
  0x13   : > { %s1086_s26 = scalar_select %p859_p12, 1, 0 }
  0x14   : > { %s868_s5 = scalar_lea.hbm %s1080_s2, %s606_s28  ;;  %s142_s6 = scalar_lea.vmem [#allocation3], %s593_s29 }
  0x15   : > { %s150_s7 = sshll.u32 %s142_s6, 4  ;;  %p872_p13 = pnand %p622_p10, %p844_p5  ;;  %s876_s7 = int_to_ptr.vmem [resolvable:$true] %s150_s7 }
  0x16   : > { %s139_s9 = scalar_lea.sflag [#allocation4], %s138_s27  ;;  %s671_s10 = scalar_lea.hbm %s868_s5, 256 }
  0x17   : > { %p672_p2 = scmp.ne.s32.totalorder %s868_s5, %s671_s10  ;;  %p673_p3 = pneg %p872_p13 }
  0x18   : > { %s676_s13 = scalar_lea.hbm %s1080_s2, 512  ;;  %p677_p5 = scmp.lt.u32.totalorder %s868_s5, %s1080_s2 }
  0x19   : > { %p674_p4 = pnand %p673_p3, %p672_p2  ;;  %p678_p8 = scmp.lt.u32.totalorder %s676_s13, %s671_s10 }
  0x1a   : > { %p680_p9 = scmp.lt.u32.totalorder %s671_s10, %s868_s5 }
  0x1b   : > { %p675_p7 = pneg %p674_p4  ;;  %p679_p10 = por %p678_p8, %p677_p5 }
  0x1d   : > { %p681_p0 = por %p680_p9, %p679_p10 }
  0x1f   : > { %p682_p1 = pnand %p681_p0, %p675_p7 }
  0x21   : > { %685 = shalt.err (!%p682_p1)
}
  0x22   : > { %s686_s21 = scalar_lea.vmem %s876_s7, 256  ;;  %s769_s23 = smov [#allocation3]  }
  0x23   : > { %p687_p2 = scmp.ne.s32.totalorder %s876_s7, %s686_s21  ;;  %s691_s27 = sshll.u32 %s769_s23, 4  ;;  %s692_s27 = int_to_ptr.vmem [resolvable:$false] %s691_s27 }
  0x24   : > { %s693_s28 = scalar_lea.vmem %s692_s27, 512  ;;  %p694_p11 = scmp.lt.s32.totalorder %s876_s7, %s692_s27 }
  0x25   : > { %p689_p4 = pnand %p687_p2, %p673_p3  ;;  %p695_p5 = scmp.lt.s32.totalorder %s693_s28, %s686_s21 }
  0x27   : > { %p690_p12 = pneg %p689_p4  ;;  %p696_p8 = por %p695_p5, %p694_p11 }
  0x29   : > { %p697_p9 = pnand %p696_p8, %p690_p12 }
  0x2b   : > { %700 = shalt.err (!%p697_p9)
}
  0x2c   : > { %617 = dma.hbm_to_vmem [thread:$0]  (!%p872_p13), %s868_s5, 256, %s876_s7, %s139_s9  }
  0x2d   : > { %p1088_p0 = scmp.lt.s32.totalorder %s767_s17, 3  ;;  %p1089_p1 = scmp.ge.s32.totalorder %s767_s17, 1 }
  0x2f   : > { %p156_p3 = pnand %p1089_p1, %p1088_p0 }
  0x30   : > { %s910_s29 = sand.u32 (!%p156_p3), 1, %s759_s15  }
  0x31   : > { %159 = sbr.rel (%p156_p3) target bundleno = 461 (0x1cd), region = 32  ;;  %s597_s30 = sshll.u32 (!%p156_p3), %s910_s29, 4 }
  0x32   : > { %s162_s4 = scalar_lea.sflag (!%p156_p3), [#allocation4], %s910_s29  ;;  %s165_s6 = scalar_lea.vmem (!%p156_p3), [#allocation3], %s597_s30 }
  0x38   : > { %746 = dma.done.wait (%p848_p6), %s162_s4, 256  }
  0x39   : > { %748 = vsyncadd (%p848_p6), %s162_s4, 4294967040  ;;  %v770_v0 = vmov 0.0   ;;  %v229_v1 = vld [vmem:[%s165_s6 + $0x8] sm:$0xff]  ;;  %v228_v2 = vld [vmem:[%s165_s6] sm:$0xff]  ;;  %vm230_vm0 = vcmask 64512   ;;  %s771_s24 = smov 17   ;;  %v188_v21 = vlaneseq }
  0x3a   : > { %301 = vmatprep.mubr.f32.mxu0 %v770_v0  ;;  %307 = vmatprep.mubr.f32.mxu1 %v770_v0  ;;  %v225_v3 = vld [vmem:[%s1078_s0] sm:$0xff]  ;;  %v226_v4 = vld [vmem:[%s1078_s0 + $0x8] sm:$0x1]  ;;  %s772_s10 = smov 16   ;;  %s773_s11 = smov 15   ;;  %v779_v31 = vmov 1.0  }
  0x3b   : > { %237 = vmatprep.subr.mxu0 %v229_v1  ;;  %608 = vmatprep.subr.mxu1 %v229_v1  ;;  %s774_s12 = smov 1   ;;  %s775_s13 = smov 127   ;;  %v943_v22 = vand.u32 127, %v188_v21 }
  0x3c   : > { %238 = vmatpush1.msra.mxu0 %v228_v2  ;;  %609 = vmatpush1.msra.mxu1 %v228_v2  ;;  %s776_s18 = smov 113   ;;  %s777_s20 = smov 112  }
  0x3d   : > { %599 = vmatmul.mubr.msk.f32.vlgmr.msra.gmra.mrb[0].mxu0 %vm230_vm0, %v225_v3  ;;  %600 = vmatmul.mubr.msk.f32.vlgmr.msra.gmra.mrb[0].mxu1 %vm230_vm0, %v226_v4  ;;  %s778_s21 = smov 111   ;;  %v191_v23 = vand.u32 15, %v943_v22  ;;  %v947_v24 = vadd.s32 128, %v943_v22  ;;  %vm193_vm1 = vcmp.lt.s32.totalorder %v943_v22, 16  ;;  %vm318_vm4 = vcmp.lt.s32.totalorder %v943_v22, 17  ;;  %s227_s23 = sld [smem:[#allocation2]] }
  0x3e   : > { %vm361_vm8 = vcmp.lt.s32.totalorder %v943_v22, 15  ;;  %v205_v40 = vsel %vm193_vm1, 0.0, %v779_v31  ;;  %vm382_vm10 = vcmp.lt.s32.totalorder %v943_v22, 1  ;;  %vm403_vm12 = vcmp.lt.s32.totalorder %v943_v22, 127  ;;  %s598_s27 = sshll.u32 %s910_s29, 1  ;;  %s607_s28 = sshll.u32 %s826_s1, 5 }
  0x3f   : > { %vm950_vm2 = vcmp.eq.s32.totalorder %v191_v23, 0  ;;  %v192_v27 = vand.u32 15, %v947_v24  ;;  %vm965_vm6 = vcmp.eq.s32.totalorder %v191_v23, 15  ;;  %vm196_vm11 = vcmp.ge.s32.totalorder %v947_v24, 240  ;;  %s187_s30 = scalar_lea.vmem [#allocation6], %s598_s27  ;;  %s1034_s7 = scalar_lea.hbm %s1081_s3, %s607_s28 }
  0x40   : > { %vm201_vm3 = vmor %vm193_vm1, %vm950_vm2  ;;  %v211_v51 = vsel %vm950_vm2, 0.0, %v779_v31  ;;  %v213_v61 = vsel %vm965_vm6, 0.0, %v779_v31  ;;  %vm424_vm14 = vcmp.lt.s32.totalorder %v943_v22, 113  ;;  %vm445_vm15 = vcmp.lt.s32.totalorder %v943_v22, 112  ;;  %s520_s4 = sshll.u32 %s187_s30, 4  ;;  %s506_s8 = scalar_lea.sflag [#allocation5], %s910_s29  ;;  %s1036_s4 = int_to_ptr.vmem [resolvable:$true] %s520_s4 }
  0x41   : > { %vm960_vm5 = vcmp.eq.s32.totalorder %v192_v27, 0  ;;  %v203_v32 = vsel %vm201_vm3, 0.0, %v779_v31  ;;  %vm207_vm7 = vmor %vm193_vm1, %vm965_vm6  ;;  %vm982_vm9 = vcmp.eq.s32.totalorder %v192_v27, 15  ;;  %vm502_vm2 = vcmp.lt.s32.totalorder %v188_v21, 256  ;;  %s701_s9 = scalar_lea.vmem %s1036_s4, 32  ;;  %p1098_p11 = scmp.ne.s32.totalorder %s1085_s25, 0 }
  0x42   : > { %v204_v36 = vsel %vm960_vm5, 0.0, %v779_v31  ;;  %v209_v45 = vsel %vm207_vm7, 0.0, %v779_v31  ;;  %v210_v50 = vsel %vm982_vm9, 0.0, %v779_v31  ;;  %vm216_vm13 = vmor %vm196_vm11, %vm960_vm5  ;;  %p702_p6 = scmp.ne.s32.totalorder %s1036_s4, %s701_s9  ;;  %s781_s1 = smov [#allocation6]  }
  0x43   : > { %vm222_vm0 = vmor %vm196_vm11, %vm982_vm9 }
  0x44   : > { %p703_p12 = pnand %p702_p6, %p1098_p11 }
  0x46   : > { %p704_p13 = pneg %p703_p12 }
 0x110   : > { %v924_v5 = vpop.f32.mrb[0].mxu0  ;;  %v309_v6 = vpop.f32.mrb[0].mxu1 }
 0x111   : > { %314 = vrot.lane.b32.xlu0 %v924_v5, %s771_s24  ;;  %v927_v7 = vpop.f32.mrb[1].mxu0  ;;  %v333_v8 = vrot.slane %v924_v5, 1  ;;  %v311_v9 = vpop.f32.mrb[1].mxu1  ;;  %v353_v11 = vrot.slane %v924_v5, 2  ;;  %v374_v13 = vrot.slane %v924_v5, 3  ;;  %v395_v15 = vrot.slane %v924_v5, 5 }
 0x112   : > { %v334_v10 = vrot.slane %v927_v7, 1  ;;  %v354_v12 = vrot.slane %v927_v7, 2  ;;  %v375_v14 = vrot.slane %v927_v7, 3  ;;  %v396_v16 = vrot.slane %v927_v7, 5 }
 0x113   : > { %337 = vrot.lane.b32.xlu1 %v333_v8, %s772_s10  ;;  %v416_v17 = vrot.slane %v924_v5, 6  ;;  %v417_v18 = vrot.slane %v927_v7, 6  ;;  %v437_v19 = vrot.slane %v924_v5, 7  ;;  %v438_v20 = vrot.slane %v927_v7, 7 }
 0x115   : > { %316 = vrot.lane.b32.xlu0 %v927_v7, %s771_s24  ;;  %s705_s24 = sshll.u32 %s781_s1, 4  ;;  %s706_s24 = int_to_ptr.vmem [resolvable:$false] %s705_s24 }
 0x116   : > { %p708_p7 = scmp.lt.s32.totalorder %s1036_s4, %s706_s24 }
 0x117   : > { %339 = vrot.lane.b32.xlu1 %v334_v10, %s772_s10  ;;  %s707_s10 = scalar_lea.vmem %s706_s24, 64 }
 0x118   : > { %p709_p10 = scmp.lt.s32.totalorder %s707_s10, %s701_s9 }
 0x119   : > { %357 = vrot.lane.b32.xlu0 %v353_v11, %s773_s11 }
 0x11a   : > { %p710_p2 = por %p709_p10, %p708_p7 }
 0x11b   : > { %359 = vrot.lane.b32.xlu1 %v354_v12, %s773_s11  ;;  %v218_v12 = vsel %vm216_vm13, 0.0, %v779_v31 }
 0x11c   : > { %p711_p4 = pnand %p710_p2, %p704_p13 }
 0x11d   : > { %378 = vrot.lane.b32.xlu0 %v374_v13, %s774_s12 }
 0x11f   : > { %380 = vrot.lane.b32.xlu1 %v375_v14, %s774_s12 }
 0x121   : > { %399 = vrot.lane.b32.xlu0 %v395_v15, %s775_s13 }
 0x123   : > { %401 = vrot.lane.b32.xlu1 %v396_v16, %s775_s13 }
 0x125   : > { %420 = vrot.lane.b32.xlu0 %v416_v17, %s776_s18 }
 0x127   : > { %422 = vrot.lane.b32.xlu1 %v417_v18, %s776_s18 }
 0x129   : > { %441 = vrot.lane.b32.xlu0 %v437_v19, %s777_s20 }
 0x12b   : > { %443 = vrot.lane.b32.xlu1 %v438_v20, %s777_s20 }
 0x12d   : > { %458 = vrot.lane.b32.xlu0 %v309_v6, %s778_s21 }
 0x12f   : > { %460 = vrot.lane.b32.xlu1 %v311_v9, %s778_s21 }
 0x183   : > { %v315_v25 = vpop.permute.xlu0 %314 }
 0x185   : > { %v338_v28 = vpop.permute.xlu1 %337 }
 0x187   : > { %v317_v29 = vpop.permute.xlu0 %316 }
 0x188   : > { %v320_v33 = vsel %vm318_vm4, %v317_v29, %v315_v25  ;;  %v319_v37 = vsel %vm318_vm4, %v315_v25, %v317_v29 }
 0x189   : > { %v340_v34 = vpop.permute.xlu1 %339  ;;  %v321_v39 = vmul.f32 %v320_v33, %v203_v32  ;;  %v322_v43 = vmul.f32 %v319_v37, %v204_v36 }
 0x18a   : > { %v342_v41 = vsel %vm193_vm1, %v340_v34, %v338_v28  ;;  %v341_v62 = vsel %vm193_vm1, %v338_v28, %v340_v34  ;;  %v220_v28 = vsel %vm196_vm11, 0.0, %v779_v31  ;;  %vm462_vm1 = vcmp.lt.s32.totalorder %v943_v22, 111 }
 0x18b   : > { %v358_v38 = vpop.permute.xlu0 %357  ;;  %v325_v48 = vrot.slane %v321_v39, 4  ;;  %v343_v49 = vmul.f32 %v342_v41, %v205_v40  ;;  %v326_v53 = vrot.slane %v322_v43, 4  ;;  %v348_v10 = vrot.slane %v341_v62, 4 }
 0x18c   : > { %v780_v62 = vmov 1966171168  }
 0x18d   : > { %v360_v42 = vpop.permute.xlu1 %359  ;;  %v329_v58 = vadd.f32 %v325_v48, %v924_v5  ;;  %v347_v59 = vrot.slane %v343_v49, 4  ;;  %v330_v2 = vadd.f32 %v326_v53, %v927_v7 }
 0x18e   : > { %v363_v46 = vsel %vm361_vm8, %v360_v42, %v358_v38  ;;  %v362_v54 = vsel %vm361_vm8, %v358_v38, %v360_v42  ;;  %v224_v42 = vsel %vm222_vm0, 0.0, %v779_v31 }
 0x18f   : > { %v379_v47 = vpop.permute.xlu0 %378  ;;  %v364_v55 = vmul.f32 %v363_v46, %v209_v45  ;;  %v365_v63 = vmul.f32 %v362_v54, %v210_v50  ;;  %v351_v11 = vadd.f32 %v347_v59, %v329_v58  ;;  %v352_v17 = vadd.f32 %v348_v10, %v330_v2 }
 0x191   : > { %v381_v52 = vpop.permute.xlu1 %380  ;;  %v368_v3 = vrot.slane %v364_v55, 4  ;;  %v369_v13 = vrot.slane %v365_v63, 4  ;;  %v475_v55 = vstv %s227_s23  ;;  %v486_v63 = vunpack.c.l.s4 %v780_v62 }
 0x192   : > { %v384_v56 = vsel %vm382_vm10, %v381_v52, %v379_v47  ;;  %v383_v60 = vsel %vm382_vm10, %v379_v47, %v381_v52 }
 0x193   : > { %v400_v57 = vpop.permute.xlu0 %399  ;;  %v385_v0 = vmul.f32 %v384_v56, %v211_v51  ;;  %v386_v6 = vmul.f32 %v383_v60, %v204_v36  ;;  %v372_v7 = vadd.f32 %v368_v3, %v351_v11  ;;  %v373_v29 = vadd.f32 %v369_v13, %v352_v17 }
 0x195   : > { %v402_v1 = vpop.permute.xlu1 %401  ;;  %v389_v14 = vrot.slane %v385_v0, 4  ;;  %v390_v20 = vrot.slane %v386_v6, 4  ;;  %v487_v0 = vunpack.c.0.s8 %v486_v63 }
 0x196   : > { %v404_v4 = vsel %vm403_vm12, %v400_v57, %v402_v1  ;;  %v405_v5 = vsel %vm403_vm12, %v402_v1, %v400_v57 }
 0x197   : > { %v406_v8 = vmul.f32 %v404_v4, %v213_v61  ;;  %v421_v9 = vpop.permute.xlu0 %420  ;;  %v407_v15 = vmul.f32 %v405_v5, %v210_v50  ;;  %v393_v30 = vadd.f32 %v389_v14, %v372_v7  ;;  %v394_v37 = vadd.f32 %v390_v20, %v373_v29 }
 0x199   : > { %v423_v16 = vpop.permute.xlu1 %422  ;;  %v410_v23 = vrot.slane %v406_v8, 4  ;;  %v411_v32 = vrot.slane %v407_v15, 4 }
 0x19a   : > { %v425_v18 = vsel %vm424_vm14, %v421_v9, %v423_v16  ;;  %v426_v19 = vsel %vm424_vm14, %v423_v16, %v421_v9 }
 0x19b   : > { %v427_v25 = vmul.f32 %v425_v18, %v211_v51  ;;  %v428_v26 = vmul.f32 %v426_v19, %v218_v12  ;;  %v442_v27 = vpop.permute.xlu0 %441  ;;  %v414_v38 = vadd.f32 %v410_v23, %v393_v30  ;;  %v415_v43 = vadd.f32 %v411_v32, %v394_v37 }
 0x19d   : > { %v431_v33 = vrot.slane %v427_v25, 4  ;;  %v444_v34 = vpop.permute.xlu1 %443  ;;  %v432_v39 = vrot.slane %v428_v26, 4 }
 0x19e   : > { %v446_v35 = vsel %vm445_vm15, %v442_v27, %v444_v34  ;;  %v447_v36 = vsel %vm445_vm15, %v444_v34, %v442_v27 }
 0x19f   : > { %v449_v40 = vmul.f32 %v447_v36, %v220_v28  ;;  %v459_v41 = vpop.permute.xlu0 %458  ;;  %v435_v44 = vadd.f32 %v431_v33, %v414_v38  ;;  %v452_v24 = vrot.slane %v446_v35, 4  ;;  %v436_v49 = vadd.f32 %v432_v39, %v415_v43 }
 0x1a1   : > { %v453_v45 = vrot.slane %v449_v40, 4  ;;  %v461_v46 = vpop.permute.xlu1 %460  ;;  %v456_v52 = vadd.f32 %v452_v24, %v435_v44 }
 0x1a2   : > { %v463_v47 = vsel %vm462_vm1, %v459_v41, %v461_v46  ;;  %v464_v48 = vsel %vm462_vm1, %v461_v46, %v459_v41 }
 0x1a3   : > { %v465_v50 = vmul.f32 %v463_v47, %v213_v61  ;;  %v466_v51 = vmul.f32 %v464_v48, %v224_v42  ;;  %v457_v53 = vadd.f32 %v453_v45, %v436_v49  ;;  %v489_v61 = vshrl.u32 %v188_v21, 7 }
 0x1a5   : > { %v469_v22 = vrot.slane %v465_v50, 4  ;;  %v470_v54 = vrot.slane %v466_v51, 4  ;;  %v490_v2 = vsub.s32 %v487_v0, %v489_v61 }
 0x1a7   : > { %v473_v56 = vadd.f32 %v469_v22, %v456_v52  ;;  %v474_v57 = vadd.f32 %v470_v54, %v457_v53 }
 0x1a9   : > { %v476_v31 = vadd.f32 %v475_v55, %v473_v56  ;;  %v477_v58 = vadd.f32 %v475_v55, %v474_v57 }
 0x1ab   : > { %v478_v59 = vmul.f32 1.442695, %v476_v31  ;;  %v480_v60 = vmul.f32 1.442695, %v477_v58 }
 0x1ad   : > { %667 = vpow2.f32 %v478_v59 }
 0x1ae   : > { %669 = vpow2.f32 %v480_v60 }
 0x1b7   : > { %v668_v1 = vpop.eup %667 }
 0x1b8   : > { %v670_v3 = vpop.eup %669 }
 0x1b9   : > { %v484_v4 = vcombine.high %v668_v1, %v670_v3 }
 0x1bb   : > { %v491_v5 = vrot.slane %v484_v4, %v490_v2 }
 0x1bd   : > { %v498_v6 = vrot.slane %v491_v5, %v490_v2 }
 0x1bf   : > { %504 = vst.msk [vmem:[%s187_s30] sm:$0x3] %vm502_vm2, %v498_v6 }
 0x1c0   : > { %714 = shalt.err (!%p711_p4)
}
 0x1c1   : > { %s715_s29 = scalar_lea.hbm %s1034_s7, 32  ;;  %s719_s13 = scalar_lea.hbm %s1081_s3, 64 }
 0x1c2   : > { %p716_p5 = scmp.ne.s32.totalorder %s1034_s7, %s715_s29  ;;  %p720_p0 = scmp.lt.u32.totalorder %s1034_s7, %s1081_s3 }
 0x1c3   : > { %p721_p1 = scmp.lt.u32.totalorder %s719_s13, %s715_s29  ;;  %p723_p6 = scmp.lt.u32.totalorder %s715_s29, %s1034_s7 }
 0x1c4   : > { %p717_p8 = pnand %p716_p5, %p1098_p11 }
 0x1c5   : > { %p722_p3 = por %p721_p1, %p720_p0 }
 0x1c6   : > { %p718_p9 = pneg %p717_p8 }
 0x1c7   : > { %p724_p12 = por %p723_p6, %p722_p3 }
 0x1c9   : > { %p725_p13 = pnand %p724_p12, %p718_p9 }
 0x1cb   : > { %728 = shalt.err (!%p725_p13)
}
 0x1cc   : > { %612 = dma.vmem_to_hbm [thread:$0]  (%p1098_p11), %s1036_s4, 32, %s1034_s7, %s506_s8  }
 0x1cd PF: > { %s532_s21 = sand.u32 1, %s755_s14   ;;  %p1099_p7 = scmp.ne.s32.totalorder %s1086_s26, 0 }
 0x1ce   : > { %p1100_p10 = scmp.ge.s32.totalorder %s767_s17, 2  ;;  %s533_s23 = scalar_lea.sflag [#allocation5], %s532_s21 }
 0x1d0   : > { %p619_p2 = pnand %p1100_p10, %p1099_p7 }
 0x1d2   : > { %750 = dma.done.wait (!%p619_p2), %s533_s23, 32  }
 0x1d3   : > { %752 = vsyncadd (!%p619_p2), %s533_s23, 4294967264  ;;  %p17_p4 = scmp.ge.s32.totalorder %s830_s19, 4   ;;  %s1101_s14 = smov %s759_s15 }
 0x1d4   : > { %s1102_s15 = smov %s763_s16  ;;  %s1103_s16 = smov %s842_s22 }
 0x1d5   : > { %s1104_s17 = smov %s830_s19  ;;  %19 = sbr.rel (!%p17_p4) target bundleno = 7 (0x7), region = 77 }
 0x1dc   :  { %538 = vsyncpa [#allocation4], 1 }
 0x1dd   :  { %540 = vsyncpa [#allocation4 + $0x1], 1 }
 0x1de   :  { %541 = vsyncpa [#allocation5], 1 }
 0x1df   :  { %543 = vsyncpa [#allocation5 + $0x1], 1 }

</bundles_post_ra>
